<compile_context>
chip_gen: v5e
topology: v5e:2x2
jax: 0.10.0
libtpu: 0.0.40
codegen_flags: <defaults>
</compile_context>

<pallas_src>
import jax
import jax.numpy as jnp
from jax.experimental import pallas as pl
from jax.experimental.pallas import tpu as pltpu


# Below this batch size the whole op is a few KB of HBM traffic; let XLA fuse it.
_PALLAS_MIN_BATCH = 1024
# Max rows per grid step.  4096 rows -> x:256KiB + other:1MiB + out:1MiB per
# buffer set (~4.6 MiB double-buffered): fits comfortably in 16 MiB (v5e default
# scoped VMEM), 32 MiB (v6e/v7x default) and 64 MiB physical (v7x).
_MAX_TB = 4096


def _linear_add_kernel(x_ref, w_ref, b_ref, other_ref, o_ref):
    # MXU matmul (f32 accumulate) + bias + elementwise add on the VPU.
    acc = jnp.dot(x_ref[...], w_ref[...], preferred_element_type=jnp.float32)
    o_ref[...] = (acc + b_ref[...] + other_ref[...]).astype(o_ref.dtype)


def linear_add_pallas(x, w, b, other):
    """x: (B, 16), w: (16, 64), b: (1, 64), other: (B, 64) -> (B, 64).

    NOTE: the result aliases `other`'s buffer (input_output_aliases); callers
    should donate `other` (see linear_add_pallas_jit) and must not reuse it.
    """
    B, K = x.shape
    _, N = w.shape

    # Batch tile: at most _MAX_TB rows per step.  For B <= _MAX_TB the block
    # spans the full batch dim (exempt from the 8-divisibility rule); for larger
    # B the tile is a multiple of 8 and any remainder becomes a masked partial
    # last block, so no whole-batch / VMEM-OOM fallback is ever taken.
    tb = B if B <= _MAX_TB else _MAX_TB
    grid = (pl.cdiv(B, tb),)

    cost = pl.CostEstimate(
        flops=2 * B * K * N,
        transcendentals=0,
        bytes_accessed=4 * (B * K + K * N + N + 2 * B * N),
    )

    return pl.pallas_call(
        _linear_add_kernel,
        out_shape=jax.ShapeDtypeStruct((B, N), x.dtype),
        grid=grid,
        in_specs=[
            pl.BlockSpec((tb, K), lambda i: (i, 0)),   # x tile per batch step
            pl.BlockSpec((K, N), lambda i: (0, 0)),    # weight, whole (replicated)
            pl.BlockSpec((1, N), lambda i: (0, 0)),    # bias, whole (replicated)
            pl.BlockSpec((tb, N), lambda i: (i, 0)),   # other tile
        ],
        out_specs=pl.BlockSpec((tb, N), lambda i: (i, 0)),
        input_output_aliases={3: 0},  # write result in-place over `other`'s buffer
        compiler_params=pltpu.CompilerParams(
            dimension_semantics=("parallel",)),  # shards batch steps across TCs (v7x)
        cost_estimate=cost,
    )(x, w, b, other)


# Donate `other` so the in-kernel aliasing actually reuses its HBM buffer
# (without donation XLA inserts a defensive copy, negating the aliasing win).
linear_add_pallas_jit = jax.jit(linear_add_pallas, donate_argnums=3)


def linear_add(x, w, b, other):
    """Dispatcher: plain fused XLA math for tiny batches, Pallas kernel otherwise."""
    B = x.shape[0]
    if B < _PALLAS_MIN_BATCH:
        return x @ w + b + other
    return linear_add_pallas(x, w, b, other)


linear_add_jit = jax.jit(linear_add, donate_argnums=3)


if __name__ == "__main__":
    key = jax.random.PRNGKey(0)
    k_x, k_other, k_w, k_b = jax.random.split(key, 4)

    B, IN, OUT = 8, 16, 64

    # Deterministic parameter init (mimicking nn.Linear's uniform(-1/sqrt(in), 1/sqrt(in)))
    bound = 1.0 / jnp.sqrt(jnp.float32(IN))
    w = jax.random.uniform(k_w, (IN, OUT), jnp.float32, -bound, bound)   # (in, out)
    b = jax.random.uniform(k_b, (1, OUT), jnp.float32, -bound, bound)

    # Inputs
    x = jax.random.normal(k_x, (B, IN), jnp.float32)
    other = jax.random.normal(k_other, (B, OUT), jnp.float32)

    # Reference computed BEFORE the kernel call: the Pallas path aliases and the
    # jit boundary donates `other`'s buffer, so `other` must not be used after.
    ref = x @ w + b + other

    # Exercise the Pallas kernel directly (the dispatcher would use plain XLA at B=8).
    out = linear_add_pallas_jit(x, w, b, other)
    out = jax.block_until_ready(out)

    assert out.shape == (B, OUT)
    assert jnp.allclose(out, ref, atol=1e-5, rtol=1e-5)

    print("KERNEL_OK")
</pallas_src>

<mosaic_0001>
module attributes {stable_mosaic.version = 11 : i64} {
  func.func @_linear_add_kernel(%arg0: i32, %arg1: memref<8x16xf32, #tpu.memory_space<vmem>>, %arg2: memref<16x64xf32, #tpu.memory_space<vmem>>, %arg3: memref<1x64xf32, #tpu.memory_space<vmem>>, %arg4: memref<8x64xf32, #tpu.memory_space<vmem>>, %arg5: memref<8x64xf32, #tpu.memory_space<vmem>>) attributes {dimension_semantics = [#tpu.dimension_semantics<parallel>], iteration_bounds = array<i64: 1>, scalar_prefetch = 0 : i64, scratch_operands = 0 : i64, tpu.core_type = #tpu.core_type<tc>, window_params = [{transform_indices = @transform_0, window_bounds = array<i64: 8, 16>}, {pipeline_mode = #tpu.pipeline_mode<synchronous>, transform_indices = @transform_1, window_bounds = array<i64: 16, 64>}, {pipeline_mode = #tpu.pipeline_mode<synchronous>, transform_indices = @transform_2, window_bounds = array<i64: 1, 64>}, {transform_indices = @transform_3, window_bounds = array<i64: 8, 64>}, {transform_indices = @transform_4, window_bounds = array<i64: 8, 64>}]} {
    %c0 = arith.constant 0 : index
    %c0_0 = arith.constant 0 : index
    %0 = vector.load %arg1[%c0, %c0_0] : memref<8x16xf32, #tpu.memory_space<vmem>>, vector<8x16xf32>
    %c0_1 = arith.constant 0 : index
    %c0_2 = arith.constant 0 : index
    %1 = vector.load %arg2[%c0_1, %c0_2] : memref<16x64xf32, #tpu.memory_space<vmem>>, vector<16x64xf32>
    %cst = arith.constant dense<0.000000e+00> : vector<8x64xf32>
    %2 = tpu.matmul %0, %1, %cst {dimension_numbers = #tpu.dot_dimension_numbers<[1], [0], [0], [1], [0, 0, 1, 1], [], []>} : vector<8x16xf32>, vector<16x64xf32>, vector<8x64xf32> -> vector<8x64xf32>
    %c0_3 = arith.constant 0 : index
    %c0_4 = arith.constant 0 : index
    %3 = vector.load %arg3[%c0_3, %c0_4] : memref<1x64xf32, #tpu.memory_space<vmem>>, vector<1x64xf32>
    %4 = vector.broadcast %3 : vector<1x64xf32> to vector<8x64xf32>
    %5 = arith.addf %2, %4 : vector<8x64xf32>
    %c0_5 = arith.constant 0 : index
    %c0_6 = arith.constant 0 : index
    %6 = vector.load %arg4[%c0_5, %c0_6] : memref<8x64xf32, #tpu.memory_space<vmem>>, vector<8x64xf32>
    %7 = arith.addf %5, %6 : vector<8x64xf32>
    %c0_7 = arith.constant 0 : index
    %c0_8 = arith.constant 0 : index
    %8 = vector.load %arg5[%c0_7, %c0_8] : memref<8x64xf32, #tpu.memory_space<vmem>>, vector<8x64xf32>
    tpu.vector_store %arg5[%c0_7, %c0_8], %7 {strides = array<i32>} : memref<8x64xf32, #tpu.memory_space<vmem>>, vector<8x64xf32>,
    return
  }
  func.func @transform_0(%arg0: i32) -> (i32, i32) {
    %c0_i32 = arith.constant 0 : i32
    %c0_i32_0 = arith.constant 0 : i32
    return %arg0, %c0_i32 : i32, i32
  }
  func.func @transform_1(%arg0: i32) -> (i32, i32) {
    %c0_i32 = arith.constant 0 : i32
    %c0_i32_0 = arith.constant 0 : i32
    %c0_i32_1 = arith.constant 0 : i32
    return %c0_i32, %c0_i32_0 : i32, i32
  }
  func.func @transform_2(%arg0: i32) -> (i32, i32) {
    %c0_i32 = arith.constant 0 : i32
    %c0_i32_0 = arith.constant 0 : i32
    %c0_i32_1 = arith.constant 0 : i32
    return %c0_i32, %c0_i32_0 : i32, i32
  }
  func.func @transform_3(%arg0: i32) -> (i32, i32) {
    %c0_i32 = arith.constant 0 : i32
    %c0_i32_0 = arith.constant 0 : i32
    return %arg0, %c0_i32 : i32, i32
  }
  func.func @transform_4(%arg0: i32) -> (i32, i32) {
    %c0_i32 = arith.constant 0 : i32
    %c0_i32_0 = arith.constant 0 : i32
    return %arg0, %c0_i32 : i32, i32
  }
}

</mosaic_0001>

<bundles_post_ra>
// kernel: linear_add_pallas.1
= control target key start
LH: loop header
LB: loop body
LE: loop exit
PB: predicated region body
PF: predicated region fallthrough
CT: control target
= control target key end

     0   :  { %9 = vsyncpa [#allocation3], 0  ;;  %s270_s0 = inlined_call_operand.hbm [shape: f32[8,16], index: 0, kind: input, shape index: {}]   ;;  %s271_s1 = inlined_call_operand.hbm [shape: f32[16,64], index: 1, kind: input, shape index: {}]   ;;  %s272_s2 = inlined_call_operand.vmem [shape: f32[1,64], index: 2, kind: input, shape index: {}]   ;;  %s273_s3 = inlined_call_operand.hbm [shape: f32[8,64], index: 3, kind: input, shape index: {}, may-alias: {3,4}]   ;;  %s274_s4 = inlined_call_operand.hbm [shape: f32[8,64], index: 4, kind: output, shape index: {}, may-alias: {3,4}]  }
   0x1   :  { %10 = vsyncpa [#allocation6], 0  ;;  %s27_s17 = sshll.u32 %s271_s1, 4  ;;  %s28_s17 = int_to_ptr.hbm [resolvable:$true] %s27_s17 }
   0x2   :  { %11 = vsyncpa [#allocation4], 0  ;;  %s224_s18 = smov [#allocation5]   ;;  %s17_s22 = sshll.u32 %s270_s0, 4  ;;  %s18_s22 = int_to_ptr.hbm [resolvable:$true] %s17_s22 }
   0x3   :  { %s29_s19 = sshll.u32 %s224_s18, 4  ;;  %s225_s23 = smov 128   ;;  %s30_s19 = int_to_ptr.vmem [resolvable:$true] %s29_s19 }
   0x4   :  { %s226_s24 = smov 8   ;;  %s227_s25 = smov [#allocation2]  }
   0x5   :  { %35 = dma.hbm_to_vmem [thread:$0]  %s28_s17, 256, %s30_s19, [#allocation6], %s225_s23, %s225_s23, %s226_s24  }
   0x6   :  { %s19_s26 = sshll.u32 %s227_s25, 4  ;;  %s43_s29 = sshll.u32 %s273_s3, 4  ;;  %s20_s26 = int_to_ptr.vmem [resolvable:$true] %s19_s26  ;;  %s44_s29 = int_to_ptr.hbm [resolvable:$true] %s43_s29 }
   0x7   :  { %22 = dma.hbm_to_vmem [thread:$0]  %s18_s22, 128, %s20_s26, [#allocation3]  }
   0x8   :  { %s228_s1 = smov [#allocation7]  }
   0x9   :  { %s45_s30 = sshll.u32 %s228_s1, 4  ;;  %s46_s30 = int_to_ptr.vmem [resolvable:$true] %s45_s30 }
   0xa   :  { %48 = dma.hbm_to_vmem [thread:$0]  %s44_s29, 128, %s46_s30, [#allocation6]  }
   0xb   :  { %218 = dma.done.wait [#allocation3], 128  }
   0xc   :  { %219 = vsyncadd [#allocation3], 4294967168 }
   0xd   :  { %220 = dma.done.wait [#allocation6], 384  }
   0xe   :  { %221 = vsyncadd [#allocation6], 4294966912  ;;  %v63_v0 = vld [vmem:[#allocation5 + $0x8] sm:$0xff]  ;;  %v62_v1 = vld [vmem:[#allocation5] sm:$0xff]  ;;  %vm68_vm0 = vcmask 130048   ;;  %s229_s5 = smov [#allocation8]  }
   0xf   :  { %86 = vmatpush.msra.mxu0 %v63_v0  ;;  %v61_v2 = vld [vmem:[#allocation2] sm:$0xff]  ;;  %v92_v5 = vld [vmem:[#allocation7] sm:$0xff]  ;;  %s101_s6 = sshll.u32 %s229_s5, 4  ;;  %s103_s9 = sshll.u32 %s274_s4, 4  ;;  %vm94_vm1 = vcmask 523264   ;;  %s102_s6 = int_to_ptr.vmem [resolvable:$true] %s101_s6  ;;  %s104_s9 = int_to_ptr.hbm [resolvable:$true] %s103_s9 }
  0x10   :  { %v121_v3 = vld [vmem:[%s272_s2] ss:$0 sm:$0xff] }
  0x11   :  { %87 = vmatpush.msra.mxu0 %v62_v1 }
  0x12   :  { %114 = vmatmul.msk.f32.vlgmr.msra.gmra.mxu0 %vm68_vm0, %v61_v2 }
  0x8f   :  { %v89_v4 = vpop.f32.mrf.mxu0 }
  0x90   :  { %v90_v6 = vadd.f32 %v121_v3, %v89_v4 }
  0x92   :  { %v93_v7 = vadd.f32 %v92_v5, %v90_v6 }
  0x94   :  { %95 = vst.msk [vmem:[#allocation8] sm:$0xff] %vm94_vm1, %v93_v7 }
  0x95   :  { %106 = dma.vmem_to_hbm [thread:$0]  %s102_s6, 128, %s104_s9, [#allocation4]  }
  0x96   :  { %222 = dma.done.wait [#allocation4], 128  }
  0x97   :  { %223 = vsyncadd [#allocation4], 4294967168 }
  0x98   :  { %111 = vsyncpa [#allocation3], 1 }
  0x99   :  { %112 = vsyncpa [#allocation6], 1 }
  0x9a   :  { %113 = vsyncpa [#allocation4], 1 }

</bundles_post_ra>
